<compile_context>
chip_gen: v5e
topology: v5e:2x2
jax: 0.10.0
libtpu: 0.0.40
codegen_flags: <defaults>
</compile_context>

<pallas_src>
import functools

import jax
import jax.numpy as jnp
from jax.experimental import pallas as pl
from jax.experimental.pallas import tpu as pltpu

C_FEAT = 2560   # EfficientNet-B7 feature channels
HIDDEN = 1024   # fc_0 output width (only used by the load-time fold / reference)


def _round_up(a, b):
    return -(-a // b) * b


def pdnet_head_kernel(x_ref, w_ref, b_ref, o_ref, acc_ref, *, inv_hw):
    """One grid step: one (batch-tile, spatial-tile) slab of features.

    x_ref:   (bt, hw_t, C)  feature slab, C lane-dense
    w_ref:   (1, C)         folded fc_0 @ fc_1 weight row
    b_ref:   (1, 1)         folded bias
    o_ref:   (bt, 1)        sigmoid output (resident across the spatial axis)
    acc_ref: (bt, 1)        running sum_hw sum_c x*w accumulator (VMEM scratch)
    """
    s = pl.program_id(1)

    @pl.when(s == 0)
    def _():
        acc_ref[...] = jnp.zeros_like(acc_ref)

    # Partial adaptive-avg-pool (sum over this spatial tile) fused with the
    # folded linear:  acc[b] += sum_c ( sum_hw x[b,hw,c] ) * w_eff[c].
    # Sum over hw first (XLU sublane reduce) so only (bt, C) multiplies remain.
    part = jnp.sum(x_ref[...], axis=1)                                  # (bt, C)
    acc_ref[...] += jnp.sum(part * w_ref[...], axis=-1, keepdims=True)  # (bt, 1)

    @pl.when(s == pl.num_programs(1) - 1)
    def _():
        logits = acc_ref[...] * inv_hw + b_ref[...]     # mean over HW + bias
        o_ref[...] = 1.0 / (1.0 + jnp.exp(-logits))     # Sigmoid (EUP exp)


def fold_pdnet_head_params(w0, b0, w1, b1):
    """Load-time fold of dropout_0 -> fc_0 -> dropout_1 -> fc_1 (eval mode).

    nn.Linear stores weight as (out, in). With dropout = identity and no
    activation between the two Linears:
        logits = (pooled @ w0.T + b0) @ w1.T + b1
               = pooled @ (w0.T @ w1.T) + (b0 @ w1.T + b1)
    """
    hi = jax.lax.Precision.HIGHEST
    w_eff = jnp.dot(w0.T, w1.T, precision=hi).reshape(1, C_FEAT)   # (1, 2560)
    b_eff = (jnp.dot(b0, w1.T, precision=hi) + b1).reshape(1, 1)   # (1, 1)
    return w_eff, b_eff


def pdnet_head(x_feat, w_eff, b_eff, *, max_hw_tile=None,
               vmem_budget_bytes=20 << 20):
    """x_feat: (B, C_FEAT, H, W) f32 encoder features. Returns (B, 1) f32."""
    B, C, H, W = x_feat.shape
    assert C == C_FEAT
    HW = H * W

    # NCHW -> (B, HW, C): channels on the lane axis (2560 = 20*128, dense),
    # spatial on sublanes. One XLA relayout of the feature map; a channels-last
    # encoder output would skip this entirely.
    x = jnp.transpose(x_feat.reshape(B, C, HW), (0, 2, 1))

    # Batch tile: whole batch if small, else 8-row tiles (8-aligned output block).
    b_tile = min(B, 8)
    B_pad = _round_up(B, b_tile)

    # Spatial tile: largest multiple of 8 such that the double-buffered input
    # block stays inside the VMEM budget; never larger than (padded) HW.
    bytes_per_row = C * 4
    max_rows = max(8, (vmem_budget_bytes // (2 * b_tile * bytes_per_row)) // 8 * 8)
    hw_tile = min(max_rows, _round_up(HW, 8))
    if max_hw_tile is not None:
        hw_tile = min(hw_tile, _round_up(max_hw_tile, 8))
    hw_tile = max(hw_tile, 8)
    HW_pad = _round_up(HW, hw_tile)

    # Zero-padding does not change the pooled sum (we divide by the true HW);
    # padded batch rows are sliced off below.
    pad_b, pad_hw = B_pad - B, HW_pad - HW
    if pad_b or pad_hw:
        x = jnp.pad(x, ((0, pad_b), (0, pad_hw), (0, 0)))

    grid = (B_pad // b_tile, HW_pad // hw_tile)   # (parallel batch, spatial reduce)

    grid_spec = pltpu.PrefetchScalarGridSpec(
        num_scalar_prefetch=0,
        grid=grid,
        in_specs=[
            pl.BlockSpec((b_tile, hw_tile, C), lambda b, s: (b, s, 0)),  # x
            pl.BlockSpec((1, C), lambda b, s: (0, 0)),                   # w_eff
            pl.BlockSpec((1, 1), lambda b, s: (0, 0)),                   # b_eff
        ],
        out_specs=pl.BlockSpec((b_tile, 1), lambda b, s: (b, 0)),
        scratch_shapes=[pltpu.VMEM((b_tile, 1), jnp.float32)],
    )

    kernel = functools.partial(pdnet_head_kernel, inv_hw=1.0 / HW)
    out = pl.pallas_call(
        kernel,
        out_shape=jax.ShapeDtypeStruct((B_pad, 1), jnp.float32),
        grid_spec=grid_spec,
        compiler_params=pltpu.CompilerParams(
            dimension_semantics=("parallel", "arbitrary"),
            vmem_limit_bytes=32 << 20,   # safe on v5e/v6e/v7x (v7x: 64 MiB phys)
        ),
    )(x, w_eff, b_eff)
    return out[:B]


def pdnet_head_ref(x_feat, w0, b0, w1, b1):
    """Pure-JAX eval-mode reference (full-f32 matmuls for a valid comparison)."""
    hi = jax.lax.Precision.HIGHEST
    pooled = jnp.mean(x_feat, axis=(2, 3))                    # (B, C)
    h = jnp.dot(pooled, w0.T, precision=hi) + b0              # (B, 1024)
    logits = jnp.dot(h, w1.T, precision=hi) + b1              # (B, 1)
    return jax.nn.sigmoid(logits)


if __name__ == "__main__":
    key = jax.random.PRNGKey(0)
    k_x, k_w0, k_b0, k_w1, k_b1 = jax.random.split(key, 5)

    B, H, W = 2, 8, 8
    # Synthetic encoder output (stands in for EfficientNet-B7 forward_features).
    x_feat = jax.random.normal(k_x, (B, C_FEAT, H, W), dtype=jnp.float32)

    # Deterministic parameter init (small scale to avoid sigmoid saturation).
    w0 = jax.random.normal(k_w0, (HIDDEN, C_FEAT), dtype=jnp.float32) * 0.02
    b0 = jax.random.normal(k_b0, (HIDDEN,), dtype=jnp.float32) * 0.02
    w1 = jax.random.normal(k_w1, (1, HIDDEN), dtype=jnp.float32) * 0.02
    b1 = jax.random.normal(k_b1, (1,), dtype=jnp.float32) * 0.02

    # Load-time weight fold (once per model load, not per inference call).
    w_eff, b_eff = fold_pdnet_head_params(w0, b0, w1, b1)

    # max_hw_tile=32 -> 2 spatial reduction steps for HW=64, exercising the
    # init / accumulate / finalize path while keeping DMA overlapped.
    out = jax.block_until_ready(pdnet_head(x_feat, w_eff, b_eff, max_hw_tile=32))
    ref = pdnet_head_ref(x_feat, w0, b0, w1, b1)
    assert out.shape == (B, 1)
    assert jnp.allclose(out, ref, atol=5e-5, rtol=5e-5), (out, ref)
    print("KERNEL_OK")
</pallas_src>

<mosaic_0001>
module attributes {stable_mosaic.version = 11 : i64} {
  func.func @pdnet_head_kernel(%arg0: i32, %arg1: i32, %arg2: memref<2x32x2560xf32, #tpu.memory_space<vmem>>, %arg3: memref<1x2560xf32, #tpu.memory_space<vmem>>, %arg4: memref<1x1xf32, #tpu.memory_space<vmem>>, %arg5: memref<2x1xf32, #tpu.memory_space<vmem>>, %arg6: memref<2x1xf32, #tpu.memory_space<vmem>>) attributes {dimension_semantics = [#tpu.dimension_semantics<parallel>, #tpu.dimension_semantics<arbitrary>], iteration_bounds = array<i64: 1, 2>, scalar_prefetch = 0 : i64, scratch_operands = 1 : i64, tpu.core_type = #tpu.core_type<tc>, window_params = [{transform_indices = @transform_0, window_bounds = array<i64: 2, 32, 2560>}, {pipeline_mode = #tpu.pipeline_mode<synchronous>, transform_indices = @transform_1, window_bounds = array<i64: 1, 2560>}, {pipeline_mode = #tpu.pipeline_mode<synchronous>, transform_indices = @transform_2, window_bounds = array<i64: 1, 1>}, {transform_indices = @transform_3, window_bounds = array<i64: 2, 1>}]} {
    %c0_i32 = arith.constant 0 : i32
    %0 = arith.cmpi eq, %arg1, %c0_i32 : i32
    %1 = arith.extui %0 : i1 to i32
    %c0_i32_0 = arith.constant 0 : i32
    %2 = arith.cmpi ne, %1, %c0_i32_0 : i32
    scf.if %2 {
      %cst_11 = arith.constant 0.000000e+00 : f32
      %16 = vector.broadcast %cst_11 : f32 to vector<2x1xf32>
      %c0_12 = arith.constant 0 : index
      %c0_13 = arith.constant 0 : index
      %17 = vector.load %arg6[%c0_12, %c0_13] : memref<2x1xf32, #tpu.memory_space<vmem>>, vector<2x1xf32>
      tpu.vector_store %arg6[%c0_12, %c0_13], %16 {strides = array<i32>} : memref<2x1xf32, #tpu.memory_space<vmem>>, vector<2x1xf32>,
    } else {
    }
    %c0 = arith.constant 0 : index
    %c0_1 = arith.constant 0 : index
    %c0_2 = arith.constant 0 : index
    %3 = vector.load %arg2[%c0, %c0_1, %c0_2] : memref<2x32x2560xf32, #tpu.memory_space<vmem>>, vector<2x32x2560xf32>
    %cst = arith.constant dense<0.000000e+00> : vector<2x2560xf32>
    %4 = vector.multi_reduction <add>, %3, %cst [1] : vector<2x32x2560xf32> to vector<2x2560xf32>
    %c0_3 = arith.constant 0 : index
    %c0_4 = arith.constant 0 : index
    %5 = vector.load %arg6[%c0_3, %c0_4] : memref<2x1xf32, #tpu.memory_space<vmem>>, vector<2x1xf32>
    %c0_5 = arith.constant 0 : index
    %c0_6 = arith.constant 0 : index
    %6 = vector.load %arg3[%c0_5, %c0_6] : memref<1x2560xf32, #tpu.memory_space<vmem>>, vector<1x2560xf32>
    %7 = vector.broadcast %6 : vector<1x2560xf32> to vector<2x2560xf32>
    %8 = arith.mulf %4, %7 : vector<2x2560xf32>
    %cst_7 = arith.constant dense<0.000000e+00> : vector<2xf32>
    %9 = vector.multi_reduction <add>, %8, %cst_7 [1] : vector<2x2560xf32> to vector<2xf32>
    %10 = vector.shape_cast %9 : vector<2xf32> to vector<2x1xf32>
    %11 = arith.addf %5, %10 : vector<2x1xf32>
    %c0_8 = arith.constant 0 : index
    %c0_9 = arith.constant 0 : index
    %12 = vector.load %arg6[%c0_8, %c0_9] : memref<2x1xf32, #tpu.memory_space<vmem>>, vector<2x1xf32>
    tpu.vector_store %arg6[%c0_8, %c0_9], %11 {strides = array<i32>} : memref<2x1xf32, #tpu.memory_space<vmem>>, vector<2x1xf32>,
    %c1_i32 = arith.constant 1 : i32
    %13 = arith.cmpi eq, %arg1, %c1_i32 : i32
    %14 = arith.extui %13 : i1 to i32
    %c0_i32_10 = arith.constant 0 : i32
    %15 = arith.cmpi ne, %14, %c0_i32_10 : i32
    scf.if %15 {
      %c0_11 = arith.constant 0 : index
      %c0_12 = arith.constant 0 : index
      %16 = vector.load %arg6[%c0_11, %c0_12] : memref<2x1xf32, #tpu.memory_space<vmem>>, vector<2x1xf32>
      %cst_13 = arith.constant 1.562500e-02 : f32
      %17 = vector.broadcast %cst_13 : f32 to vector<2x1xf32>
      %18 = arith.mulf %16, %17 : vector<2x1xf32>
      %c0_14 = arith.constant 0 : index
      %c0_15 = arith.constant 0 : index
      %19 = vector.load %arg4[%c0_14, %c0_15] : memref<1x1xf32, #tpu.memory_space<vmem>>, vector<1x1xf32>
      %20 = vector.broadcast %19 : vector<1x1xf32> to vector<2x1xf32>
      %21 = arith.addf %18, %20 : vector<2x1xf32>
      %cst_16 = arith.constant 0.000000e+00 : f32
      %22 = vector.broadcast %cst_16 : f32 to vector<2x1xf32>
      %23 = arith.subf %22, %21 : vector<2x1xf32>
      %24 = math.exp %23 : vector<2x1xf32>
      %cst_17 = arith.constant 1.000000e+00 : f32
      %25 = vector.broadcast %cst_17 : f32 to vector<2x1xf32>
      %26 = arith.addf %25, %24 : vector<2x1xf32>
      %cst_18 = arith.constant 1.000000e+00 : f32
      %27 = vector.broadcast %cst_18 : f32 to vector<2x1xf32>
      %28 = arith.divf %27, %26 : vector<2x1xf32>
      %c0_19 = arith.constant 0 : index
      %c0_20 = arith.constant 0 : index
      %29 = vector.load %arg5[%c0_19, %c0_20] : memref<2x1xf32, #tpu.memory_space<vmem>>, vector<2x1xf32>
      tpu.vector_store %arg5[%c0_19, %c0_20], %28 {strides = array<i32>} : memref<2x1xf32, #tpu.memory_space<vmem>>, vector<2x1xf32>,
    } else {
    }
    return
  }
  func.func @transform_0(%arg0: i32, %arg1: i32) -> (i32, i32, i32) {
    %c0_i32 = arith.constant 0 : i32
    %c0_i32_0 = arith.constant 0 : i32
    return %arg0, %arg1, %c0_i32 : i32, i32, i32
  }
  func.func @transform_1(%arg0: i32, %arg1: i32) -> (i32, i32) {
    %c0_i32 = arith.constant 0 : i32
    %c0_i32_0 = arith.constant 0 : i32
    %c0_i32_1 = arith.constant 0 : i32
    return %c0_i32, %c0_i32_0 : i32, i32
  }
  func.func @transform_2(%arg0: i32, %arg1: i32) -> (i32, i32) {
    %c0_i32 = arith.constant 0 : i32
    %c0_i32_0 = arith.constant 0 : i32
    %c0_i32_1 = arith.constant 0 : i32
    return %c0_i32, %c0_i32_0 : i32, i32
  }
  func.func @transform_3(%arg0: i32, %arg1: i32) -> (i32, i32) {
    %c0_i32 = arith.constant 0 : i32
    %c0_i32_0 = arith.constant 0 : i32
    return %arg0, %c0_i32 : i32, i32
  }
}

</mosaic_0001>

<bundles_post_ra>
// kernel: tpu_custom_call.1
= control target key start
LH: loop header
LB: loop body
LE: loop exit
PB: predicated region body
PF: predicated region fallthrough
CT: control target
= control target key end

     0   :  { %s1813_s0 = inlined_call_operand.hbm [shape: f32[2,64,2560], index: 0, kind: input, shape index: {}]   ;;  %s1814_s1 = inlined_call_operand.hbm [shape: f32[1,2560], index: 1, kind: input, shape index: {}]   ;;  %s1815_s2 = inlined_call_operand.<no memory space> [shape: f32[1,1], index: 2, kind: input, shape index: {}]   ;;  %s1816_s3 = inlined_call_operand.vmem [shape: f32[2,1], index: 3, kind: output, shape index: {}]  }
   0x1   :  { %v8_v0 = vstv %s1815_s2 }
   0x2   :  { %9 = vst [vmem:[#allocation3] sm:$0x1] %v8_v0 }
   0x3   :  { %10 = vsyncpa [#allocation5], 0 }
   0x4   :  { %12 = vsyncpa [#allocation5 + $0x1], 0 }
   0x5   :  { %13 = vsyncpa [#allocation7], 0  ;;  %s1342_s14 = smov 0   ;;  %s1344_s15 = smov 0  }
   0x6   :  { %s1346_s16 = smov 0   ;;  %s1348_s17 = smov 0  }
   0x7   :  { %s1350_s18 = smov 0   ;;  %s1352_s19 = smov 0  }
   0x8 LB: > { %s1126_s2 = sadd.s32 4294967295, %s1309_s19   ;;  %s28_s20 = sadd.s32 1, %s1305_s18  ;;  %s1309_s19 = sphi %s1352_s19, %s19_s19   ;;  %s1305_s18 = sphi %s1350_s18, %s1847_s18   ;;  %s1301_s17 = sphi %s1348_s17, %s1846_s17   ;;  %s1297_s16 = sphi %s1346_s16, %s1845_s16   ;;  %s1293_s15 = sphi %s1344_s15, %s1844_s15   ;;  %s1289_s14 = sphi %s1342_s14, %s1843_s14  }
   0x9   : > { %p29_p0 = scmp.ge.s32.totalorder %s28_s20, 2  ;;  %s40_s21 = sadd.s32 1, %s1297_s16 }
   0xa   : > { %p47_p1 = scmp.ne.s32.totalorder %s1297_s16, %s1293_s15  ;;  %p48_p2 = scmp.eq.s32.totalorder %s1309_s19, 0 }
   0xb   : > { %s1849_s20 = smov (%p29_p0, %s28_s20), 0  ;;  %p53_p4 = scmp.ne.s32.totalorder %s1293_s15, %s1289_s14 }
   0xc   : > { %p1378_p3 = por %p48_p2, %p47_p1  ;;  %s36_s23 = ssub.s32 %s1305_s18, %s1849_s20 }
   0xd   : > { %p1385_p5 = scmp.eq.s32.totalorder %s1126_s2, 0  ;;  %p38_p6 = scmp.eq.s32.totalorder %s36_s23, 0 }
   0xe   : > { %p1127_p7 = scmp.ge.s32.totalorder %s1309_s19, 1  ;;  %p132_p9 = scmp.lt.s32.totalorder %s1309_s19, 3 }
   0xf   : > { %p1392_p8 = por %p1385_p5, %p53_p4  ;;  %s144_s30 = sshll.u32 %s1814_s1, 4  ;;  %s145_s30 = int_to_ptr.hbm [resolvable:$true] %s144_s30 }
  0x10   : > { %s1398_s26 = scalar_select %p38_p6, %s1297_s16, %s40_s21  }
  0x11   : > { %p1400_p10 = pnand %p1127_p7, %p132_p9  ;;  %s1311_s4 = smov [#allocation6]  }
  0x12   : > { %s146_s5 = sshll.u32 %s1311_s4, 4  ;;  %p1129_p13 = scmp.ge.s32.totalorder %s1309_s19, 2  ;;  %s147_s5 = int_to_ptr.vmem [resolvable:$true] %s146_s5 }
  0x13   : > { %p1158_p11 = pneg %p1400_p10 }
  0x14   : > { %156 = sbr.rel (%p1129_p13) target bundleno = 40 (0x28), region = 24 }
  0x15   : > { %p1159_p12 = pnand %p1158_p11, %p1385_p5 }
  0x17   : > { %1161 = dma.hbm_to_vmem [thread:$0]  (!%p1159_p12), %s145_s30, 320, %s147_s5, [#allocation7]  }
  0x19   : > { %s160_s6 = sand.u32 1, %s1297_s16   ;;  %s1143_s7 = smul.u32 640, %s1305_s18 }
  0x1a   : > { %s1142_s8 = smul.u32 1280, %s160_s6  ;;  %s1312_s23 = smov 20480  }
  0x1b   : > { %s173_s11 = scalar_lea.hbm %s1813_s0, %s1143_s7  ;;  %1148 = sst [smem:[#allocation9]] (%p1378_p3), %s1312_s23 }
  0x1c   : > { %s186_s12 = sshll.u32 %s173_s11, 4  ;;  %s164_s14 = scalar_lea.vmem [#allocation4], %s1142_s8  ;;  %s187_s12 = int_to_ptr.hbm [resolvable:$true] %s186_s12 }
  0x1d   : > { %s1147_s13 = scalar_select %p1378_p3, [#allocation0], [#allocation10] }
  0x1e   : > { %s188_s2 = sshll.u32 %s164_s14, 4  ;;  %s1313_s28 = smov 10240   ;;  %s189_s2 = int_to_ptr.vmem [resolvable:$true] %s188_s2 }
  0x1f   : > { %s178_s21 = sld [smem:[%s1147_s13]]   ;;  %s1314_s29 = smov 4  }
  0x20   : > { %1149 = sst [smem:[#allocation9 + $0x1]] (%p1378_p3), %s1313_s28  ;;  %s1315_s30 = smov 2560  }
  0x21   : > { %1150 = sst [smem:[#allocation9 + $0x2]] (%p1378_p3), %s1314_s29  ;;  %s1316_s5 = smov 160  }
  0x22   : > { %1151 = sst [smem:[#allocation9 + $0x3]] (%p1378_p3), %s1315_s30  ;;  %s161_s8 = scalar_lea.sflag [#allocation5], %s160_s6 }
  0x23   : > { %1152 = sst [smem:[#allocation9 + $0x4]] (%p1378_p3), %s1315_s30  ;;  %s1317_s9 = smov [#allocation8]  }
  0x24   : > { %1153 = sst [smem:[#allocation9 + $0x5]] (%p1378_p3), %s1316_s5 }
  0x25   : > { %s1133_s4 = sshll.u32 %s178_s21, 26 }
  0x26   : > { %s1134_s7 = sadd.s32 134217728, %s1133_s4 }
  0x27   : > { %1154 = dma.general (%p1378_p3), %s187_s12, 20480, %s189_s2, %s161_s8, %s1317_s9, [#allocation9], %s1134_s7, 0  }
  0x28 PF: > { %213 = sbr.rel (%p1400_p10) target bundleno = 362 (0x16a), region = 32 }
  0x2d   : > { %s215_s10 = sand.u32 1, %s1293_s15  }
  0x2e   : > { %s1144_s11 = smul.u32 1280, %s215_s10  ;;  %s216_s13 = scalar_lea.sflag [#allocation5], %s215_s10 }
  0x30   : > { %s1436_s14 = scalar_lea.vmem [#allocation4], %s1144_s11 }
  0x31   : > { %1280 = dma.done.wait (%p1392_p8), %s216_s13, 20480  }
  0x32   : > { %1282 = vsyncadd (%p1392_p8), %s216_s13, 4294946816 }
  0x33   : > { %1284 = dma.done.wait (%p1385_p5), [#allocation7], 320  }
  0x34   : > { %1286 = vsyncadd (%p1385_p5), [#allocation7], 4294966976  ;;  %p1137_p0 = scmp.ne.s32.totalorder %s1301_s17, 0 }
  0x36   : > { %256 = sbr.rel (%p1137_p0) target bundleno = 61 (0x3d), region = 44 }
  0x3b   : > { %vm257_vm0 = vcmask 1024   ;;  %v1318_v1 = vmov 0.0  }
  0x3c   : > { %258 = vst.msk [vmem:[#allocation2] sm:$0x3] %vm257_vm0, %v1318_v1 }
  0x3d PF: > { %v259_v2 = vld [vmem:[%s1436_s14] sm:$0xff]  ;;  %v260_v4 = vld [vmem:[%s1436_s14 + $0x8] sm:$0xff]  ;;  %v261_v6 = vld [vmem:[%s1436_s14 + $0x10] sm:$0xff]  ;;  %vm907_vm1 = vcmask 1041409   ;;  %vm967_vm2 = vcmask 1041408   ;;  %vm1010_vm3 = vcmask 1024  }
  0x3e   : > { %v279_v3 = vld [vmem:[%s1436_s14 + $0xa0] sm:$0xff]  ;;  %v280_v5 = vld [vmem:[%s1436_s14 + $0xa8] sm:$0xff]  ;;  %v281_v7 = vld [vmem:[%s1436_s14 + $0xb0] sm:$0xff]  ;;  %p1138_p1 = scmp.ne.s32.totalorder %s1301_s17, 1 }
  0x3f   : > { %v419_v8 = vadd.f32 %v279_v3, %v259_v2  ;;  %v262_v9 = vld [vmem:[%s1436_s14 + $0x18] sm:$0xff]  ;;  %v299_v11 = vld [vmem:[%s1436_s14 + $0x140] sm:$0xff]  ;;  %v428_v12 = vadd.f32 %v280_v5, %v260_v4  ;;  %v300_v13 = vld [vmem:[%s1436_s14 + $0x148] sm:$0xff]  ;;  %v437_v14 = vadd.f32 %v281_v7, %v261_v6 }
  0x40   : > { %v282_v10 = vld [vmem:[%s1436_s14 + $0xb8] sm:$0xff]  ;;  %v263_v15 = vld [vmem:[%s1436_s14 + $0x20] sm:$0xff]  ;;  %v301_v17 = vld [vmem:[%s1436_s14 + $0x150] sm:$0xff] }
  0x41   : > { %v283_v16 = vld [vmem:[%s1436_s14 + $0xc0] sm:$0xff]  ;;  %v420_v18 = vadd.f32 %v419_v8, %v299_v11  ;;  %v446_v19 = vadd.f32 %v282_v10, %v262_v9  ;;  %v302_v20 = vld [vmem:[%s1436_s14 + $0x158] sm:$0xff]  ;;  %v429_v22 = vadd.f32 %v428_v12, %v300_v13  ;;  %v264_v23 = vld [vmem:[%s1436_s14 + $0x28] sm:$0xff]  ;;  %v438_v25 = vadd.f32 %v437_v14, %v301_v17 }
  0x42   : > { %v319_v21 = vld [vmem:[%s1436_s14 + $0x1e0] sm:$0xff]  ;;  %v320_v24 = vld [vmem:[%s1436_s14 + $0x1e8] sm:$0xff]  ;;  %v455_v26 = vadd.f32 %v283_v16, %v263_v15  ;;  %v321_v29 = vld [vmem:[%s1436_s14 + $0x1f0] sm:$0xff] }
  0x43   : > { %v284_v27 = vld [vmem:[%s1436_s14 + $0xc8] sm:$0xff]  ;;  %v303_v28 = vld [vmem:[%s1436_s14 + $0x160] sm:$0xff]  ;;  %v265_v30 = vld [vmem:[%s1436_s14 + $0x30] sm:$0xff]  ;;  %v421_v32 = vadd.f32 %v420_v18, %v319_v21  ;;  %v447_v33 = vadd.f32 %v446_v19, %v302_v20  ;;  %v430_v35 = vadd.f32 %v429_v22, %v320_v24  ;;  %v439_v37 = vadd.f32 %v438_v25, %v321_v29 }
  0x44   : > { %v285_v31 = vld [vmem:[%s1436_s14 + $0xd0] sm:$0xff]  ;;  %v322_v34 = vld [vmem:[%s1436_s14 + $0x1f8] sm:$0xff]  ;;  %v456_v38 = vadd.f32 %v455_v26, %v303_v28  ;;  %v464_v39 = vadd.f32 %v284_v27, %v264_v23  ;;  %v304_v41 = vld [vmem:[%s1436_s14 + $0x168] sm:$0xff] }
  0x45   : > { %v266_v36 = vld [vmem:[%s1436_s14 + $0x38] sm:$0xff]  ;;  %v323_v42 = vld [vmem:[%s1436_s14 + $0x200] sm:$0xff]  ;;  %v473_v43 = vadd.f32 %v285_v31, %v265_v30  ;;  %v305_v44 = vld [vmem:[%s1436_s14 + $0x170] sm:$0xff]  ;;  %v422_v45 = vrot.slane %v421_v32, 4  ;;  %v448_v46 = vadd.f32 %v447_v33, %v322_v34  ;;  %v431_v47 = vrot.slane %v430_v35, 4 }
  0x46   : > { %v286_v40 = vld [vmem:[%s1436_s14 + $0xd8] sm:$0xff]  ;;  %v440_v48 = vrot.slane %v439_v37, 4  ;;  %v457_v49 = vadd.f32 %v456_v38, %v323_v42  ;;  %v465_v50 = vadd.f32 %v464_v39, %v304_v41  ;;  %v324_v53 = vld [vmem:[%s1436_s14 + $0x208] sm:$0xff]  ;;  %v325_v55 = vld [vmem:[%s1436_s14 + $0x210] sm:$0xff] }
  0x47   : > { %v482_v51 = vadd.f32 %v286_v40, %v266_v36  ;;  %v306_v52 = vld [vmem:[%s1436_s14 + $0x178] sm:$0xff]  ;;  %v474_v54 = vadd.f32 %v473_v43, %v305_v44  ;;  %v423_v56 = vadd.f32 %v422_v45, %v421_v32  ;;  %v449_v57 = vrot.slane %v448_v46, 4  ;;  %v267_v3 = vld [vmem:[%s1436_s14 + $0x40] sm:$0xff]  ;;  %v268_v4 = vld [vmem:[%s1436_s14 + $0x48] sm:$0xff] }
  0x48   : > { %v432_v58 = vadd.f32 %v431_v47, %v430_v35  ;;  %v441_v59 = vadd.f32 %v440_v48, %v439_v37  ;;  %v458_v60 = vrot.slane %v457_v49, 4  ;;  %v466_v61 = vadd.f32 %v465_v50, %v324_v53  ;;  %v326_v63 = vld [vmem:[%s1436_s14 + $0x218] sm:$0xff]  ;;  %v287_v5 = vld [vmem:[%s1436_s14 + $0xe0] sm:$0xff]  ;;  %v269_v7 = vld [vmem:[%s1436_s14 + $0x50] sm:$0xff] }
  0x49   : > { %v483_v62 = vadd.f32 %v482_v51, %v306_v52  ;;  %v475_v0 = vadd.f32 %v474_v54, %v325_v55  ;;  %v424_v1 = vrot.slane %v423_v56, 2  ;;  %v450_v2 = vadd.f32 %v449_v57, %v448_v46  ;;  %v288_v8 = vld [vmem:[%s1436_s14 + $0xe8] sm:$0xff]  ;;  %v289_v9 = vld [vmem:[%s1436_s14 + $0xf0] sm:$0xff]  ;;  %v270_v15 = vld [vmem:[%s1436_s14 + $0x58] sm:$0xff] }
  0x4a   : > { %v433_v6 = vrot.slane %v432_v58, 2  ;;  %v442_v10 = vrot.slane %v441_v59, 2  ;;  %v459_v11 = vadd.f32 %v458_v60, %v457_v49  ;;  %v467_v12 = vrot.slane %v466_v61, 4  ;;  %v290_v16 = vld [vmem:[%s1436_s14 + $0xf8] sm:$0xff]  ;;  %v271_v20 = vld [vmem:[%s1436_s14 + $0x60] sm:$0xff]  ;;  %v308_v26 = vld [vmem:[%s1436_s14 + $0x188] sm:$0xff] }
  0x4b   : > { %v484_v13 = vadd.f32 %v483_v62, %v326_v63  ;;  %v476_v14 = vrot.slane %v475_v0, 4  ;;  %v425_v17 = vadd.f32 %v424_v1, %v423_v56  ;;  %v451_v18 = vrot.slane %v450_v2, 2  ;;  %v307_v21 = vld [vmem:[%s1436_s14 + $0x180] sm:$0xff]  ;;  %v309_v27 = vld [vmem:[%s1436_s14 + $0x190] sm:$0xff]  ;;  %v272_v32 = vld [vmem:[%s1436_s14 + $0x68] sm:$0xff] }
  0x4c   : > { %v491_v19 = vadd.f32 %v287_v5, %v267_v3  ;;  %v434_v22 = vadd.f32 %v433_v6, %v432_v58  ;;  %v500_v23 = vadd.f32 %v288_v8, %v268_v4  ;;  %v509_v24 = vadd.f32 %v289_v9, %v269_v7  ;;  %v291_v25 = vld [vmem:[%s1436_s14 + $0x100] sm:$0xff]  ;;  %v273_v33 = vld [vmem:[%s1436_s14 + $0x70] sm:$0xff]  ;;  %v274_v34 = vld [vmem:[%s1436_s14 + $0x78] sm:$0xff] }
  0x4d   : > { %v443_v28 = vadd.f32 %v442_v10, %v441_v59  ;;  %v460_v29 = vrot.slane %v459_v11, 2  ;;  %v468_v30 = vadd.f32 %v467_v12, %v466_v61  ;;  %v485_v31 = vrot.slane %v484_v13, 4  ;;  %v275_v37 = vld [vmem:[%s1436_s14 + $0x80] sm:$0xff]  ;;  %v292_v38 = vld [vmem:[%s1436_s14 + $0x108] sm:$0xff]  ;;  %v293_v39 = vld [vmem:[%s1436_s14 + $0x110] sm:$0xff] }
  0x4e   : > { %v477_v35 = vadd.f32 %v476_v14, %v475_v0  ;;  %v518_v36 = vadd.f32 %v290_v16, %v270_v15  ;;  %v310_v40 = vld [vmem:[%s1436_s14 + $0x198] sm:$0xff]  ;;  %v426_v41 = vrot.slane %v425_v17, 1  ;;  %v452_v42 = vadd.f32 %v451_v18, %v450_v2  ;;  %v295_v45 = vld [vmem:[%s1436_s14 + $0x120] sm:$0xff]  ;;  %v328_v52 = vld [vmem:[%s1436_s14 + $0x228] sm:$0xff] }
  0x4f   : > { %v492_v43 = vadd.f32 %v491_v19, %v307_v21  ;;  %v294_v44 = vld [vmem:[%s1436_s14 + $0x118] sm:$0xff]  ;;  %v327_v46 = vld [vmem:[%s1436_s14 + $0x220] sm:$0xff]  ;;  %v435_v47 = vrot.slane %v434_v22, 1  ;;  %v501_v48 = vadd.f32 %v500_v23, %v308_v26  ;;  %v510_v49 = vadd.f32 %v509_v24, %v309_v27  ;;  %v329_v53 = vld [vmem:[%s1436_s14 + $0x230] sm:$0xff] }
  0x50   : > { %v527_v50 = vadd.f32 %v291_v25, %v271_v20  ;;  %v311_v51 = vld [vmem:[%s1436_s14 + $0x1a0] sm:$0xff]  ;;  %v444_v54 = vrot.slane %v443_v28, 1  ;;  %v461_v55 = vadd.f32 %v460_v29, %v459_v11  ;;  %v469_v56 = vrot.slane %v468_v30, 2  ;;  %v312_v62 = vld [vmem:[%s1436_s14 + $0x1a8] sm:$0xff]  ;;  %v313_v63 = vld [vmem:[%s1436_s14 + $0x1b0] sm:$0xff] }
  0x51   : > { %v486_v57 = vadd.f32 %v485_v31, %v484_v13  ;;  %v478_v58 = vrot.slane %v477_v35, 2  ;;  %v519_v59 = vadd.f32 %v518_v36, %v310_v40  ;;  %v536_v60 = vadd.f32 %v292_v38, %v272_v32  ;;  %v330_v0 = vld [vmem:[%s1436_s14 + $0x238] sm:$0xff]  ;;  %v315_v10 = vld [vmem:[%s1436_s14 + $0x1c0] sm:$0xff]  ;;  %v276_v16 = vld [vmem:[%s1436_s14 + $0x88] sm:$0xff] }
  0x52   : > { %v545_v61 = vadd.f32 %v293_v39, %v273_v33  ;;  %v1508_v1 = vadd.f32 %v426_v41, %v425_v17  ;;  %v453_v2 = vrot.slane %v452_v42, 1  ;;  %v493_v3 = vadd.f32 %v492_v43, %v327_v46  ;;  %v314_v5 = vld [vmem:[%s1436_s14 + $0x1b8] sm:$0xff]  ;;  %v331_v11 = vld [vmem:[%s1436_s14 + $0x240] sm:$0xff]  ;;  %v277_v17 = vld [vmem:[%s1436_s14 + $0x90] sm:$0xff] }
  0x53   : > { %v554_v4 = vadd.f32 %v294_v44, %v274_v34  ;;  %v502_v6 = vadd.f32 %v501_v48, %v328_v52  ;;  %v511_v7 = vadd.f32 %v510_v49, %v329_v53  ;;  %v528_v8 = vadd.f32 %v527_v50, %v311_v51  ;;  %v296_v18 = vld [vmem:[%s1436_s14 + $0x128] sm:$0xff]  ;;  %v278_v24 = vld [vmem:[%s1436_s14 + $0x98] sm:$0xff]  ;;  %v333_v26 = vld [vmem:[%s1436_s14 + $0x250] sm:$0xff] }
  0x54   : > { %v563_v9 = vadd.f32 %v295_v45, %v275_v37  ;;  %v1513_v12 = vadd.f32 %v435_v47, %v434_v22  ;;  %v462_v13 = vrot.slane %v461_v55, 1  ;;  %v470_v14 = vadd.f32 %v469_v56, %v468_v30  ;;  %v332_v25 = vld [vmem:[%s1436_s14 + $0x248] sm:$0xff]  ;;  %v297_v31 = vld [vmem:[%s1436_s14 + $0x130] sm:$0xff]  ;;  %v298_v32 = vld [vmem:[%s1436_s14 + $0x138] sm:$0xff] }
  0x55   : > { %v487_v15 = vrot.slane %v486_v57, 2  ;;  %v479_v19 = vadd.f32 %v478_v58, %v477_v35  ;;  %v520_v20 = vadd.f32 %v519_v59, %v330_v0  ;;  %v537_v21 = vadd.f32 %v536_v60, %v312_v62  ;;  %v334_v33 = vld [vmem:[%s1436_s14 + $0x258] sm:$0xff]  ;;  %v335_v38 = vld [vmem:[%s1436_s14 + $0x260] sm:$0xff]  ;;  %v317_v53 = vld [vmem:[%s1436_s14 + $0x1d0] sm:$0xff] }
  0x56   : > { %v546_v23 = vadd.f32 %v545_v61, %v313_v63  ;;  %v1521_v27 = vadd.f32 %v444_v54, %v443_v28  ;;  %v1523_v22 = vadd.f32 %v453_v2, %v452_v42  ;;  %v494_v29 = vrot.slane %v493_v3, 4  ;;  %v316_v42 = vld [vmem:[%s1436_s14 + $0x1c8] sm:$0xff]  ;;  %v339_v43 = vld [vmem:[%s1436_s14 + $0x280] sm:$0xff]  ;;  %v318_v54 = vld [vmem:[%s1436_s14 + $0x1d8] sm:$0xff] }
  0x57   : > { %v555_v30 = vadd.f32 %v554_v4, %v314_v5  ;;  %v503_v34 = vrot.slane %v502_v6, 4  ;;  %v512_v35 = vrot.slane %v511_v7, 4  ;;  %v529_v36 = vadd.f32 %v528_v8, %v331_v11  ;;  %v359_v44 = vld [vmem:[%s1436_s14 + $0x320] sm:$0xff]  ;;  %v336_v59 = vld [vmem:[%s1436_s14 + $0x268] sm:$0xff]  ;;  %v341_v8 = vld [vmem:[%s1436_s14 + $0x290] sm:$0xff] }
  0x58   : > { %v564_v37 = vadd.f32 %v563_v9, %v315_v10  ;;  %v1529_v39 = vadd.f32 %v462_v13, %v461_v55  ;;  %v471_v28 = vrot.slane %v470_v14, 1  ;;  %v488_v40 = vadd.f32 %v487_v15, %v486_v57  ;;  %v340_v0 = vld [vmem:[%s1436_s14 + $0x288] sm:$0xff]  ;;  %v361_v9 = vld [vmem:[%s1436_s14 + $0x330] sm:$0xff] }
  0x59   : > { %v572_v41 = vadd.f32 %v296_v18, %v276_v16  ;;  %v480_v45 = vrot.slane %v479_v19, 1  ;;  %v521_v46 = vrot.slane %v520_v20, 4  ;;  %v538_v47 = vadd.f32 %v537_v21, %v332_v25  ;;  %v360_v2 = vld [vmem:[%s1436_s14 + $0x328] sm:$0xff]  ;;  %v337_v15 = vld [vmem:[%s1436_s14 + $0x270] sm:$0xff]  ;;  %v338_v16 = vld [vmem:[%s1436_s14 + $0x278] sm:$0xff] }
  0x5a   : > { %v547_v48 = vadd.f32 %v546_v23, %v333_v26  ;;  %v495_v49 = vadd.f32 %v494_v29, %v493_v3  ;;  %v556_v50 = vadd.f32 %v555_v30, %v334_v33  ;;  %v581_v51 = vadd.f32 %v297_v31, %v277_v17  ;;  %v379_v3 = vld [vmem:[%s1436_s14 + $0x3c0] sm:$0xff]  ;;  %v342_v23 = vld [vmem:[%s1436_s14 + $0x298] sm:$0xff]  ;;  %v380_v30 = vld [vmem:[%s1436_s14 + $0x3c8] sm:$0xff] }
  0x5b   : > { %v590_v52 = vadd.f32 %v298_v32, %v278_v24  ;;  %v504_v55 = vadd.f32 %v503_v34, %v502_v6  ;;  %v513_v56 = vadd.f32 %v512_v35, %v511_v7  ;;  %v530_v57 = vrot.slane %v529_v36, 4  ;;  %v362_v29 = vld [vmem:[%s1436_s14 + $0x338] sm:$0xff]  ;;  %v399_v31 = vld [vmem:[%s1436_s14 + $0x460] sm:$0xff] }
  0x5c   : > { %v565_v58 = vadd.f32 %v564_v37, %v335_v38  ;;  %v1537_v60 = vadd.f32 %v471_v28, %v470_v14  ;;  %v489_v61 = vrot.slane %v488_v40, 1  ;;  %v573_v62 = vadd.f32 %v572_v41, %v316_v42  ;;  %v381_v37 = vld [vmem:[%s1436_s14 + $0x3d0] sm:$0xff] }
  0x5d   : > { %v599_v63 = vadd.f32 %v359_v44, %v339_v43  ;;  %v1542_v4 = vadd.f32 %v480_v45, %v479_v19  ;;  %v522_v5 = vadd.f32 %v521_v46, %v520_v20  ;;  %v539_v6 = vrot.slane %v538_v47, 4 }
  0x5e   : > { %v548_v7 = vrot.slane %v547_v48, 4  ;;  %v496_v10 = vrot.slane %v495_v49, 2  ;;  %v557_v11 = vrot.slane %v556_v50, 4  ;;  %v582_v13 = vadd.f32 %v581_v51, %v317_v53  ;;  %v382_v53 = vld [vmem:[%s1436_s14 + $0x3d8] sm:$0xff] }
  0x5f   : > { %v591_v14 = vadd.f32 %v590_v52, %v318_v54  ;;  %v505_v17 = vrot.slane %v504_v55, 2  ;;  %v514_v18 = vrot.slane %v513_v56, 2  ;;  %v531_v19 = vadd.f32 %v530_v57, %v529_v36 }
  0x60   : > { %v566_v21 = vrot.slane %v565_v58, 4  ;;  %v1549_v20 = vadd.f32 %v489_v61, %v488_v40  ;;  %v574_v24 = vadd.f32 %v573_v62, %v336_v59  ;;  %v600_v25 = vadd.f32 %v599_v63, %v379_v3 }
  0x61   : > { %v608_v26 = vadd.f32 %v360_v2, %v340_v0  ;;  %v523_v32 = vrot.slane %v522_v5, 2  ;;  %v540_v33 = vadd.f32 %v539_v6, %v538_v47  ;;  %v549_v34 = vadd.f32 %v548_v7, %v547_v48  ;;  %v400_v47 = vld [vmem:[%s1436_s14 + $0x468] sm:$0xff]  ;;  %v402_v7 = vld [vmem:[%s1436_s14 + $0x478] sm:$0xff] }
  0x62   : > { %v617_v35 = vadd.f32 %v361_v9, %v341_v8  ;;  %v497_v38 = vadd.f32 %v496_v10, %v495_v49  ;;  %v558_v28 = vadd.f32 %v557_v11, %v556_v50  ;;  %v583_v36 = vadd.f32 %v582_v13, %v337_v15  ;;  %v401_v49 = vld [vmem:[%s1436_s14 + $0x470] sm:$0xff] }
  0x63   : > { %v592_v41 = vadd.f32 %v591_v14, %v338_v16  ;;  %v506_v40 = vadd.f32 %v505_v17, %v504_v55  ;;  %v515_v42 = vadd.f32 %v514_v18, %v513_v56  ;;  %v532_v43 = vrot.slane %v531_v19, 2  ;;  %v343_v17 = vld [vmem:[%s1436_s14 + $0x2a0] sm:$0xff]  ;;  %v344_v18 = vld [vmem:[%s1436_s14 + $0x2a8] sm:$0xff] }
  0x64   : > { %v567_v44 = vadd.f32 %v566_v21, %v565_v58  ;;  %v575_v45 = vrot.slane %v574_v24, 4  ;;  %v601_v46 = vadd.f32 %v600_v25, %v399_v31  ;;  %v609_v51 = vadd.f32 %v608_v26, %v380_v30  ;;  %v345_v26 = vld [vmem:[%s1436_s14 + $0x2b0] sm:$0xff] }
  0x65   : > { %v626_v52 = vadd.f32 %v362_v29, %v342_v23  ;;  %v524_v54 = vadd.f32 %v523_v32, %v522_v5  ;;  %v541_v48 = vrot.slane %v540_v33, 2  ;;  %v550_v57 = vrot.slane %v549_v34, 2  ;;  %v364_v29 = vld [vmem:[%s1436_s14 + $0x348] sm:$0xff]  ;;  %v365_v30 = vld [vmem:[%s1436_s14 + $0x350] sm:$0xff] }
  0x66   : > { %v618_v59 = vadd.f32 %v617_v35, %v381_v37  ;;  %v498_v50 = vrot.slane %v497_v38, 1  ;;  %v559_v61 = vrot.slane %v558_v28, 2  ;;  %v584_v62 = vrot.slane %v583_v36, 4 }
  0x67   : > { %v593_v63 = vrot.slane %v592_v41, 4  ;;  %v507_v55 = vrot.slane %v506_v40, 1  ;;  %v516_v56 = vrot.slane %v515_v42, 1  ;;  %v533_v58 = vadd.f32 %v532_v43, %v531_v19  ;;  %v363_v19 = vld [vmem:[%s1436_s14 + $0x340] sm:$0xff] }
  0x68   : > { %v568_v0 = vrot.slane %v567_v44, 2  ;;  %v576_v2 = vadd.f32 %v575_v45, %v574_v24  ;;  %v602_v3 = vrot.slane %v601_v46, 4  ;;  %v610_v6 = vadd.f32 %v609_v51, %v400_v47  ;;  %v347_v45 = vld [vmem:[%s1436_s14 + $0x2c0] sm:$0xff] }
  0x69   : > { %v627_v5 = vadd.f32 %v626_v52, %v382_v53  ;;  %v525_v8 = vrot.slane %v524_v54, 1  ;;  %v542_v9 = vadd.f32 %v541_v48, %v540_v33  ;;  %v551_v10 = vadd.f32 %v550_v57, %v549_v34  ;;  %v367_v48 = vld [vmem:[%s1436_s14 + $0x360] sm:$0xff]  ;;  %v384_v57 = vld [vmem:[%s1436_s14 + $0x3e8] sm:$0xff] }
  0x6a   : > { %v619_v11 = vadd.f32 %v618_v59, %v401_v49  ;;  %v1559_v13 = vadd.f32 %v498_v50, %v497_v38  ;;  %v560_v14 = vadd.f32 %v559_v61, %v558_v28  ;;  %v585_v15 = vadd.f32 %v584_v62, %v583_v36  ;;  %v346_v36 = vld [vmem:[%s1436_s14 + $0x2b8] sm:$0xff]  ;;  %v385_v59 = vld [vmem:[%s1436_s14 + $0x3f0] sm:$0xff] }
  0x6b   : > { %v594_v16 = vadd.f32 %v593_v63, %v592_v41  ;;  %v1564_v21 = vadd.f32 %v507_v55, %v506_v40  ;;  %v1566_v23 = vadd.f32 %v516_v56, %v515_v42  ;;  %v534_v24 = vrot.slane %v533_v58, 1  ;;  %v366_v41 = vld [vmem:[%s1436_s14 + $0x358] sm:$0xff]  ;;  %v349_v63 = vld [vmem:[%s1436_s14 + $0x2d0] sm:$0xff]  ;;  %v351_v56 = vld [vmem:[%s1436_s14 + $0x2e0] sm:$0xff] }
  0x6c   : > { %v569_v25 = vadd.f32 %v568_v0, %v567_v44  ;;  %v577_v31 = vrot.slane %v576_v2, 2  ;;  %v603_v32 = vadd.f32 %v602_v3, %v601_v46  ;;  %v611_v33 = vrot.slane %v610_v6, 4  ;;  %v383_v46 = vld [vmem:[%s1436_s14 + $0x3e0] sm:$0xff]  ;;  %v350_v55 = vld [vmem:[%s1436_s14 + $0x2d8] sm:$0xff] }
  0x6d   : > { %v628_v34 = vadd.f32 %v627_v5, %v402_v7  ;;  %v1571_v35 = vadd.f32 %v525_v8, %v524_v54  ;;  %v543_v37 = vrot.slane %v542_v9, 1  ;;  %v552_v38 = vrot.slane %v551_v10, 1  ;;  %v348_v54 = vld [vmem:[%s1436_s14 + $0x2c8] sm:$0xff]  ;;  %v386_v8 = vld [vmem:[%s1436_s14 + $0x3f8] sm:$0xff] }
  0x6e   : > { %v620_v28 = vrot.slane %v619_v11, 4  ;;  %v561_v40 = vrot.slane %v560_v14, 1  ;;  %v586_v42 = vrot.slane %v585_v15, 2  ;;  %v595_v43 = vrot.slane %v594_v16, 2  ;;  %v368_v7 = vld [vmem:[%s1436_s14 + $0x368] sm:$0xff] }
  0x6f   : > { %v635_v44 = vadd.f32 %v363_v19, %v343_v17  ;;  %v1577_v51 = vadd.f32 %v534_v24, %v533_v58  ;;  %v570_v52 = vrot.slane %v569_v25, 1  ;;  %v644_v53 = vadd.f32 %v364_v29, %v344_v18  ;;  %v371_v24 = vld [vmem:[%s1436_s14 + $0x380] sm:$0xff] }
  0x70   : > { %v653_v47 = vadd.f32 %v365_v30, %v345_v26  ;;  %v578_v49 = vadd.f32 %v577_v31, %v576_v2  ;;  %v604_v50 = vrot.slane %v603_v32, 2  ;;  %v612_v61 = vadd.f32 %v611_v33, %v610_v6  ;;  %v369_v2 = vld [vmem:[%s1436_s14 + $0x370] sm:$0xff]  ;;  %v387_v31 = vld [vmem:[%s1436_s14 + $0x400] sm:$0xff] }
  0x71   : > { %1825 = vst [vmem:[#allocation13_spill] sm:$0xff] %v1577_v51  ;;  %v629_v62 = vrot.slane %v628_v34, 4  ;;  %v1586_v58 = vadd.f32 %v543_v37, %v542_v9  ;;  %v1588_v0 = vadd.f32 %v552_v38, %v551_v10  ;;  %v621_v3 = vadd.f32 %v620_v28, %v619_v11  ;;  %v370_v9 = vld [vmem:[%s1436_s14 + $0x378] sm:$0xff]  ;;  %v403_v10 = vld [vmem:[%s1436_s14 + $0x480] sm:$0xff]  ;;  %v405_v33 = vld [vmem:[%s1436_s14 + $0x490] sm:$0xff] }
  0x72   : > { %v662_v5 = vadd.f32 %v366_v41, %v346_v36  ;;  %v1593_v6 = vadd.f32 %v561_v40, %v560_v14  ;;  %v1595_v17 = vadd.f32 %v586_v42, %v585_v15  ;;  %v1597_v18 = vadd.f32 %v595_v43, %v594_v16  ;;  %v404_v14 = vld [vmem:[%s1436_s14 + $0x488] sm:$0xff]  ;;  %v389_v43 = vld [vmem:[%s1436_s14 + $0x410] sm:$0xff] }
  0x73   : > { %1826 = vst [vmem:[#allocation14_spill] sm:$0xff] %v1586_v58  ;;  %v636_v19 = vadd.f32 %v635_v44, %v383_v46  ;;  %v1602_v26 = vadd.f32 %v570_v52, %v569_v25  ;;  %v645_v11 = vadd.f32 %v644_v53, %v384_v57  ;;  %v654_v29 = vadd.f32 %v653_v47, %v385_v59  ;;  %v352_v28 = vld [vmem:[%s1436_s14 + $0x2e8] sm:$0xff]  ;;  %v406_v44 = vld [vmem:[%s1436_s14 + $0x498] sm:$0xff]  ;;  %v391_v47 = vld [vmem:[%s1436_s14 + $0x420] sm:$0xff] }
  0x74   : > { %1827 = vst [vmem:[#allocation15_spill] sm:$0xff] %v1588_v0  ;;  %v671_v30 = vadd.f32 %v367_v48, %v347_v45  ;;  %v579_v15 = vrot.slane %v578_v49, 1  ;;  %v605_v16 = vadd.f32 %v604_v50, %v603_v32  ;;  %v613_v37 = vrot.slane %v612_v61, 2  ;;  %v388_v42 = vld [vmem:[%s1436_s14 + $0x408] sm:$0xff]  ;;  %v353_v50 = vld [vmem:[%s1436_s14 + $0x2f0] sm:$0xff] }
  0x75   : > { %1828 = vst [vmem:[#allocation16_spill] sm:$0xff] %v1593_v6  ;;  %v630_v38 = vadd.f32 %v629_v62, %v628_v34  ;;  %v622_v36 = vrot.slane %v621_v3, 2  ;;  %v663_v25 = vadd.f32 %v662_v5, %v386_v8  ;;  %v680_v41 = vadd.f32 %v368_v7, %v348_v54  ;;  %v372_v53 = vld [vmem:[%s1436_s14 + $0x388] sm:$0xff]  ;;  %v390_v34 = vld [vmem:[%s1436_s14 + $0x418] sm:$0xff]  ;;  %v373_v62 = vld [vmem:[%s1436_s14 + $0x390] sm:$0xff] }
  0x76   : > { %1829 = vst [vmem:[#allocation17_spill] sm:$0xff] %v1595_v17  ;;  %v689_v40 = vadd.f32 %v369_v2, %v349_v63  ;;  %v637_v46 = vadd.f32 %v636_v19, %v403_v10  ;;  %v698_v52 = vadd.f32 %v370_v9, %v350_v55  ;;  %v707_v32 = vadd.f32 %v371_v24, %v351_v56  ;;  %v407_v63 = vld [vmem:[%s1436_s14 + $0x4a0] sm:$0xff]  ;;  %v354_v2 = vld [vmem:[%s1436_s14 + $0x2f8] sm:$0xff] }
  0x77   : > { %1830 = vst [vmem:[#allocation18_spill] sm:$0xff] %v1597_v18  ;;  %v646_v54 = vadd.f32 %v645_v11, %v404_v14  ;;  %v655_v57 = vadd.f32 %v654_v29, %v405_v33  ;;  %v672_v59 = vadd.f32 %v671_v30, %v387_v31  ;;  %v1619_v5 = vadd.f32 %v579_v15, %v578_v49  ;;  %v374_v8 = vld [vmem:[%s1436_s14 + $0x398] sm:$0xff]  ;;  %v408_v11 = vld [vmem:[%s1436_s14 + $0x4a8] sm:$0xff]  ;;  %v409_v29 = vld [vmem:[%s1436_s14 + $0x4b0] sm:$0xff] }
  0x78   : > { %1831 = vst [vmem:[#allocation19_spill] sm:$0xff] %v1602_v26  ;;  %v606_v55 = vrot.slane %v605_v16, 1  ;;  %v614_v56 = vadd.f32 %v613_v37, %v612_v61  ;;  %v631_v7 = vrot.slane %v630_v38, 2  ;;  %v623_v19 = vadd.f32 %v622_v36, %v621_v3  ;;  %v392_v33 = vld [vmem:[%s1436_s14 + $0x428] sm:$0xff]  ;;  %v410_v61 = vld [vmem:[%s1436_s14 + $0x4b8] sm:$0xff]  ;;  %v411_v15 = vld [vmem:[%s1436_s14 + $0x4c0] sm:$0xff] }
  0x79   : > { %1832 = vst [vmem:[#allocation20_spill] sm:$0xff] %v1619_v5  ;;  %v664_v9 = vadd.f32 %v663_v25, %v406_v44  ;;  %v681_v24 = vadd.f32 %v680_v41, %v388_v42  ;;  %v690_v10 = vadd.f32 %v689_v40, %v389_v43  ;;  %v638_v30 = vrot.slane %v637_v46, 4  ;;  %v393_v36 = vld [vmem:[%s1436_s14 + $0x430] sm:$0xff]  ;;  %v355_v43 = vld [vmem:[%s1436_s14 + $0x300] sm:$0xff] }
  0x7a   : > { %v699_v31 = vadd.f32 %v698_v52, %v390_v34  ;;  %v708_v49 = vadd.f32 %v707_v32, %v391_v47  ;;  %v716_v14 = vadd.f32 %v372_v53, %v352_v28  ;;  %v647_v37 = vrot.slane %v646_v54, 4  ;;  %v375_v44 = vld [vmem:[%s1436_s14 + $0x3a0] sm:$0xff]  ;;  %v394_v52 = vld [vmem:[%s1436_s14 + $0x438] sm:$0xff] }
  0x7b   : > { %v656_v48 = vrot.slane %v655_v57, 4  ;;  %v673_v45 = vadd.f32 %v672_v59, %v407_v63  ;;  %v725_v3 = vadd.f32 %v373_v62, %v353_v50  ;;  %v1629_v25 = vadd.f32 %v606_v55, %v605_v16  ;;  %v412_v62 = vld [vmem:[%s1436_s14 + $0x4c8] sm:$0xff] }
  0x7c   : > { %v615_v41 = vrot.slane %v614_v56, 1  ;;  %v632_v40 = vadd.f32 %v631_v7, %v630_v38  ;;  %v734_v42 = vadd.f32 %v374_v8, %v354_v2  ;;  %v624_v28 = vrot.slane %v623_v19, 1  ;;  %v356_v2 = vld [vmem:[%s1436_s14 + $0x308] sm:$0xff]  ;;  %v413_v8 = vld [vmem:[%s1436_s14 + $0x4d0] sm:$0xff] }
  0x7d   : > { %v665_v32 = vrot.slane %v664_v9, 4  ;;  %v682_v53 = vadd.f32 %v681_v24, %v408_v11  ;;  %v691_v34 = vadd.f32 %v690_v10, %v409_v29  ;;  %v639_v47 = vadd.f32 %v638_v30, %v637_v46  ;;  %v376_v46 = vld [vmem:[%s1436_s14 + $0x3a8] sm:$0xff]  ;;  %v395_v29 = vld [vmem:[%s1436_s14 + $0x440] sm:$0xff]  ;;  %v414_v30 = vld [vmem:[%s1436_s14 + $0x4d8] sm:$0xff] }
  0x7e   : > { %v700_v59 = vadd.f32 %v699_v31, %v410_v61  ;;  %v709_v50 = vadd.f32 %v708_v49, %v411_v15  ;;  %v717_v16 = vadd.f32 %v716_v14, %v392_v33  ;;  %v648_v63 = vadd.f32 %v647_v37, %v646_v54  ;;  %v377_v14 = vld [vmem:[%s1436_s14 + $0x3b0] sm:$0xff] }
  0x7f   : > { %v657_v38 = vadd.f32 %v656_v48, %v655_v57  ;;  %v674_v55 = vrot.slane %v673_v45, 4  ;;  %v726_v7 = vadd.f32 %v725_v3, %v393_v36  ;;  %v1637_v5 = vadd.f32 %v615_v41, %v614_v56  ;;  %v357_v57 = vld [vmem:[%s1436_s14 + $0x310] sm:$0xff] }
  0x80   : > { %v633_v24 = vrot.slane %v632_v40, 1  ;;  %v735_v10 = vadd.f32 %v734_v42, %v394_v52  ;;  %v743_v11 = vadd.f32 %v375_v44, %v355_v43  ;;  %v1642_v31 = vadd.f32 %v624_v28, %v623_v19  ;;  %v358_v42 = vld [vmem:[%s1436_s14 + $0x318] sm:$0xff]  ;;  %v396_v28 = vld [vmem:[%s1436_s14 + $0x448] sm:$0xff] }
  0x81   : > { %v666_v49 = vadd.f32 %v665_v32, %v664_v9  ;;  %v683_v54 = vrot.slane %v682_v53, 4  ;;  %v692_v48 = vrot.slane %v691_v34, 4  ;;  %v640_v33 = vrot.slane %v639_v47, 2  ;;  %v378_v52 = vld [vmem:[%s1436_s14 + $0x3b8] sm:$0xff]  ;;  %v415_v32 = vld [vmem:[%s1436_s14 + $0x4e0] sm:$0xff] }
  0x82   : > { %v701_v56 = vrot.slane %v700_v59, 4  ;;  %v710_v61 = vrot.slane %v709_v50, 4  ;;  %v718_v15 = vadd.f32 %v717_v16, %v412_v62  ;;  %v649_v37 = vrot.slane %v648_v63, 2  ;;  %v397_v62 = vld [vmem:[%s1436_s14 + $0x450] sm:$0xff] }
  0x83   : > { %v658_v3 = vrot.slane %v657_v38, 2  ;;  %v675_v36 = vadd.f32 %v674_v55, %v673_v45  ;;  %v727_v41 = vadd.f32 %v726_v7, %v413_v8  ;;  %v1647_v19 = vadd.f32 %v633_v24, %v632_v40 }
  0x84   : > { %v736_v9 = vadd.f32 %v735_v10, %v414_v30  ;;  %v744_v43 = vadd.f32 %v743_v11, %v395_v29  ;;  %v752_v44 = vadd.f32 %v376_v46, %v356_v2  ;;  %v667_v18 = vrot.slane %v666_v49, 2  ;;  %v398_v29 = vld [vmem:[%s1436_s14 + $0x458] sm:$0xff] }
  0x85   : > { %v684_v26 = vadd.f32 %v683_v54, %v682_v53  ;;  %v693_v17 = vadd.f32 %v692_v48, %v691_v34  ;;  %v761_v16 = vadd.f32 %v377_v14, %v357_v57  ;;  %v641_v6 = vadd.f32 %v640_v33, %v639_v47  ;;  %v416_v53 = vld [vmem:[%s1436_s14 + $0x4e8] sm:$0xff]  ;;  %v417_v47 = vld [vmem:[%s1436_s14 + $0x4f0] sm:$0xff] }
  0x86   : > { %v702_v0 = vadd.f32 %v701_v56, %v700_v59  ;;  %v711_v45 = vadd.f32 %v710_v61, %v709_v50  ;;  %v719_v55 = vrot.slane %v718_v15, 4  ;;  %v650_v40 = vadd.f32 %v649_v37, %v648_v63 }
  0x87   : > { %v659_v7 = vadd.f32 %v658_v3, %v657_v38  ;;  %v676_v8 = vrot.slane %v675_v36, 2  ;;  %v728_v24 = vrot.slane %v727_v41, 4  ;;  %v737_v2 = vrot.slane %v736_v9, 4 }
  0x88   : > { %v745_v10 = vadd.f32 %v744_v43, %v415_v32  ;;  %v753_v11 = vadd.f32 %v752_v44, %v396_v28  ;;  %v770_v46 = vadd.f32 %v378_v52, %v358_v42  ;;  %v668_v30 = vadd.f32 %v667_v18, %v666_v49  ;;  %v418_v43 = vld [vmem:[%s1436_s14 + $0x4f8] sm:$0xff] }
  0x89   : > { %v685_v34 = vrot.slane %v684_v26, 2  ;;  %v694_v54 = vrot.slane %v693_v17, 2  ;;  %v762_v48 = vadd.f32 %v761_v16, %v397_v62  ;;  %v642_v59 = vrot.slane %v641_v6, 1 }
  0x8a   : > { %v703_v50 = vrot.slane %v702_v0, 2  ;;  %v712_v57 = vrot.slane %v711_v45, 2  ;;  %v720_v14 = vadd.f32 %v719_v55, %v718_v15  ;;  %v651_v63 = vrot.slane %v650_v40, 1 }
  0x8b   : > { %v660_v38 = vrot.slane %v659_v7, 1  ;;  %v677_v33 = vadd.f32 %v676_v8, %v675_v36  ;;  %v729_v56 = vadd.f32 %v728_v24, %v727_v41  ;;  %v738_v61 = vadd.f32 %v737_v2, %v736_v9  ;;  %v1659_v36 = vld [vmem:[#allocation6] sm:$0xff] }
  0x8c   : > { %v746_v37 = vrot.slane %v745_v10, 4  ;;  %v754_v3 = vadd.f32 %v753_v11, %v416_v53  ;;  %v771_v42 = vadd.f32 %v770_v46, %v398_v29  ;;  %v669_v44 = vrot.slane %v668_v30, 1 }
  0x8d   : > { %v686_v18 = vadd.f32 %v685_v34, %v684_v26  ;;  %v695_v49 = vadd.f32 %v694_v54, %v693_v17  ;;  %v763_v52 = vadd.f32 %v762_v48, %v417_v47  ;;  %v643_v28 = vadd.f32 %v642_v59, %v641_v6 }
  0x8e   : > { %v704_v32 = vadd.f32 %v703_v50, %v702_v0  ;;  %v713_v16 = vadd.f32 %v712_v57, %v711_v45  ;;  %v721_v62 = vrot.slane %v720_v14, 2  ;;  %v652_v58 = vadd.f32 %v651_v63, %v650_v40 }
  0x8f   : > { %v1657_v51 = vadd.f32 %v660_v38, %v659_v7  ;;  %v678_v15 = vrot.slane %v677_v33, 1  ;;  %v730_v55 = vrot.slane %v729_v56, 2  ;;  %v739_v41 = vrot.slane %v738_v61, 2 }
  0x90   : > { %v747_v9 = vadd.f32 %v746_v37, %v745_v10  ;;  %v755_v8 = vrot.slane %v754_v3, 4  ;;  %v772_v24 = vadd.f32 %v771_v42, %v418_v43  ;;  %v1661_v2 = vadd.f32 %v669_v44, %v668_v30 }
  0x91   : > { %v687_v26 = vrot.slane %v686_v18, 1  ;;  %v696_v17 = vrot.slane %v695_v49, 1  ;;  %v764_v11 = vrot.slane %v763_v52, 4  ;;  %v705_v6 = vrot.slane %v704_v32, 1 }
  0x92   : > { %v714_v0 = vrot.slane %v713_v16, 1  ;;  %v722_v45 = vadd.f32 %v721_v62, %v720_v14  ;;  %v786_v40 = vperm.slane %v1659_v36, 0  ;;  %v1664_v7 = vadd.f32 %v678_v15, %v677_v33 }
  0x93   : > { %v731_v46 = vadd.f32 %v730_v55, %v729_v56  ;;  %v787_v29 = vperm.slane %v1659_v36, 1  ;;  %v788_v53 = vperm.slane %v1659_v36, 2  ;;  %v740_v10 = vadd.f32 %v739_v41, %v738_v61 }
  0x94   : > { %v748_v34 = vrot.slane %v747_v9, 2  ;;  %v756_v54 = vadd.f32 %v755_v8, %v754_v3  ;;  %v773_v30 = vrot.slane %v772_v24, 4  ;;  %v1668_v48 = vadd.f32 %v687_v26, %v686_v18 }
  0x95   : > { %v1670_v47 = vadd.f32 %v696_v17, %v695_v49  ;;  %v765_v59 = vadd.f32 %v764_v11, %v763_v52  ;;  %v789_v50 = vperm.slane %v1659_v36, 3  ;;  %v1673_v57 = vadd.f32 %v705_v6, %v704_v32 }
  0x96   : > { %v1675_v14 = vadd.f32 %v714_v0, %v713_v16  ;;  %v723_v63 = vrot.slane %v722_v45, 1  ;;  %v846_v38 = vmul.f32 %v786_v40, %v1629_v25  ;;  %v732_v33 = vrot.slane %v731_v46, 1 }
  0x97   : > { %v790_v56 = vperm.slane %v1659_v36, 4  ;;  %v847_v61 = vmul.f32 %v787_v29, %v1637_v5  ;;  %v848_v37 = vmul.f32 %v788_v53, %v1642_v31  ;;  %v741_v3 = vrot.slane %v740_v10, 1  ;;  %v1689_v31 = vld [vmem:[#allocation6 + $0x8] sm:$0xff] }
  0x98   : > { %v1681_v42 = vadd.f32 %v748_v34, %v747_v9  ;;  %v757_v43 = vrot.slane %v756_v54, 2  ;;  %v774_v44 = vadd.f32 %v773_v30, %v772_v24  ;;  %v766_v18 = vrot.slane %v765_v59, 2 }
  0x99   : > { %v791_v49 = vperm.slane %v1659_v36, 5  ;;  %v792_v52 = vperm.slane %v1659_v36, 6  ;;  %v849_v32 = vmul.f32 %v789_v50, %v1647_v19  ;;  %v826_v25 = vmul.f32 %v786_v40, %v1508_v1 }
  0x9a   : > { %v827_v16 = vmul.f32 %v787_v29, %v1513_v12  ;;  %v828_v5 = vmul.f32 %v788_v53, %v1521_v27  ;;  %v906_v62 = vrot.slane %v846_v38, 7  ;;  %v850_v15 = vmul.f32 %v790_v56, %v643_v28 }
  0x9b   : > { %v909_v55 = vrot.slane %v847_v61, 7  ;;  %v911_v41 = vrot.slane %v848_v37, 7  ;;  %v1691_v9 = vadd.f32 %v723_v63, %v722_v45  ;;  %v1693_v8 = vadd.f32 %v732_v33, %v731_v46 }
  0x9c   : > { %v1695_v24 = vadd.f32 %v741_v3, %v740_v10  ;;  %v775_v19 = vrot.slane %v774_v44, 2  ;;  %v793_v1 = vperm.slane %v1659_v36, 7  ;;  %v829_v12 = vmul.f32 %v789_v50, %v1523_v22 }
  0x9d   : > { %v851_v26 = vmul.f32 %v791_v49, %v652_v58  ;;  %v913_v27 = vrot.slane %v849_v32, 7  ;;  %v750_v17 = vrot.slane %v1681_v42, 1  ;;  %v794_v28 = vperm.slane %v1689_v31, 0 }
  0x9e   : > { %v830_v11 = vmul.f32 %v790_v56, %v1529_v39  ;;  %v908_v6 = vsel %vm907_vm1, %v906_v62, %v826_v25  ;;  %v852_v0 = vmul.f32 %v792_v52, %v1657_v51  ;;  %v910_v45 = vsel %vm907_vm1, %v909_v55, %v827_v16 }
  0x9f   : > { %v912_v40 = vsel %vm907_vm1, %v911_v41, %v828_v5  ;;  %v915_v46 = vrot.slane %v850_v15, 7  ;;  %v1706_v36 = vadd.f32 %v757_v43, %v756_v54  ;;  %v795_v22 = vperm.slane %v1689_v31, 1 }
  0xa0   : > { %v831_v58 = vmul.f32 %v791_v49, %v1537_v60  ;;  %v853_v29 = vmul.f32 %v793_v1, %v1661_v2  ;;  %v914_v39 = vsel %vm907_vm1, %v913_v27, %v829_v12  ;;  %v917_v53 = vrot.slane %v851_v26, 7 }
  0xa1   : > { %v968_v10 = vsel %vm967_vm2, %v908_v6, 0.0  ;;  %v796_v51 = vperm.slane %v1689_v31, 2  ;;  %v832_v34 = vmul.f32 %v792_v52, %v1542_v4  ;;  %v969_v30 = vsel %vm967_vm2, %v910_v45, 0.0 }
  0xa2   : > { %v971_v54 = vsel %vm967_vm2, %v912_v40, 0.0  ;;  %v854_v50 = vmul.f32 %v794_v28, %v1664_v7  ;;  %v916_v60 = vsel %vm907_vm1, %v915_v46, %v830_v11  ;;  %v919_v63 = vrot.slane %v852_v0, 7  ;;  %v1833_v46 = vld [vmem:[#allocation13_spill] sm:$0xff] }
  0xa3   : > { %v970_v38 = vadd.f32 %v969_v30, %v968_v10  ;;  %v767_v2 = vadd.f32 %v766_v18, %v765_v59  ;;  %v797_v33 = vperm.slane %v1689_v31, 3  ;;  %v833_v56 = vmul.f32 %v793_v1, %v1549_v20  ;;  %v1739_v1 = vld [vmem:[#allocation6 + $0x10] sm:$0xf]  ;;  %v1834_v10 = vld [vmem:[#allocation14_spill] sm:$0xff] }
  0xa4   : > { %v973_v61 = vsel %vm967_vm2, %v914_v39, 0.0  ;;  %v855_v37 = vmul.f32 %v795_v22, %v1668_v48  ;;  %v918_v4 = vsel %vm907_vm1, %v917_v53, %v831_v58  ;;  %v921_v3 = vrot.slane %v853_v29, 7 }
  0xa5   : > { %v972_v43 = vadd.f32 %v971_v54, %v970_v38  ;;  %v776_v49 = vadd.f32 %v775_v19, %v774_v44  ;;  %v798_v7 = vperm.slane %v1689_v31, 4  ;;  %v834_v52 = vmul.f32 %v794_v28, %v1559_v13  ;;  %v1835_v38 = vld [vmem:[#allocation15_spill] sm:$0xff] }
  0xa6   : > { %v975_v32 = vsel %vm967_vm2, %v916_v60, 0.0  ;;  %v856_v59 = vmul.f32 %v796_v51, %v1670_v47  ;;  %v920_v18 = vsel %vm907_vm1, %v919_v63, %v832_v34  ;;  %v923_v20 = vrot.slane %v854_v50, 7 }
  0xa7   : > { %v974_v25 = vadd.f32 %v973_v61, %v972_v43  ;;  %v751_v16 = vadd.f32 %v750_v17, %v1681_v42  ;;  %v799_v48 = vperm.slane %v1689_v31, 5  ;;  %v835_v5 = vmul.f32 %v795_v22, %v1564_v21 }
  0xa8   : > { %v977_v44 = vsel %vm967_vm2, %v918_v4, 0.0  ;;  %v857_v62 = vmul.f32 %v797_v33, %v1673_v57  ;;  %v922_v13 = vsel %vm907_vm1, %v921_v3, %v833_v56  ;;  %v925_v15 = vrot.slane %v855_v37, 7 }
  0xa9   : > { %v976_v55 = vadd.f32 %v975_v32, %v974_v25  ;;  %v759_v47 = vrot.slane %v1706_v36, 1  ;;  %v800_v41 = vperm.slane %v1689_v31, 6  ;;  %v836_v19 = vmul.f32 %v796_v51, %v1566_v23 }
  0xaa   : > { %v979_v42 = vsel %vm967_vm2, %v920_v18, 0.0  ;;  %v858_v21 = vmul.f32 %v798_v7, %v1675_v14  ;;  %v924_v12 = vsel %vm907_vm1, %v923_v20, %v834_v52  ;;  %v927_v26 = vrot.slane %v856_v59, 7  ;;  %v1837_v20 = vld [vmem:[#allocation17_spill] sm:$0xff] }
  0xab   : > { %v978_v57 = vadd.f32 %v977_v44, %v976_v55  ;;  %v768_v27 = vrot.slane %v767_v2, 1  ;;  %v801_v17 = vperm.slane %v1689_v31, 7  ;;  %v837_v28 = vmul.f32 %v797_v33, %v1571_v35  ;;  %v1840_v55 = vld [vmem:[#allocation18_spill] sm:$0xff] }
  0xac   : > { %v981_v11 = vsel %vm967_vm2, %v922_v13, 0.0  ;;  %v859_v6 = vmul.f32 %v799_v48, %v1691_v9  ;;  %v926_v23 = vsel %vm907_vm1, %v925_v15, %v835_v5  ;;  %v929_v0 = vrot.slane %v857_v62, 7 }
  0xad   : > { %v980_v45 = vadd.f32 %v979_v42, %v978_v57  ;;  %v777_v40 = vrot.slane %v776_v49, 1  ;;  %v802_v14 = vperm.slane %v1739_v1, 0  ;;  %v838_v22 = vmul.f32 %v798_v7, %v1833_v46 }
  0xae   : > { %v983_v58 = vsel %vm967_vm2, %v924_v12, 0.0  ;;  %v860_v29 = vmul.f32 %v800_v41, %v1693_v8  ;;  %v928_v31 = vsel %vm907_vm1, %v927_v26, %v836_v19  ;;  %v931_v35 = vrot.slane %v858_v21, 7  ;;  %v1842_v19 = vld [vmem:[#allocation20_spill] sm:$0xff] }
  0xaf   : > { %v982_v39 = vadd.f32 %v981_v11, %v980_v45  ;;  %v760_v53 = vadd.f32 %v759_v47, %v1706_v36  ;;  %v803_v9 = vperm.slane %v1739_v1, 1  ;;  %v839_v51 = vmul.f32 %v799_v48, %v1834_v10  ;;  %v1839_v48 = vld [vmem:[#allocation19_spill] sm:$0xff] }
  0xb0   : > { %v985_v34 = vsel %vm967_vm2, %v926_v23, 0.0  ;;  %v861_v30 = vmul.f32 %v801_v17, %v1695_v24  ;;  %v930_v54 = vsel %vm907_vm1, %v929_v0, %v837_v28  ;;  %v933_v50 = vrot.slane %v859_v6, 7  ;;  %v1836_v24 = vld [vmem:[#allocation16_spill] sm:$0xff] }
  0xb1   : > { %v984_v60 = vadd.f32 %v983_v58, %v982_v39  ;;  %v769_v63 = vadd.f32 %v768_v27, %v767_v2  ;;  %v804_v8 = vperm.slane %v1739_v1, 2  ;;  %v840_v33 = vmul.f32 %v800_v41, %v1835_v38 }
  0xb2   : > { %v987_v56 = vsel %vm967_vm2, %v928_v31, 0.0  ;;  %v862_v36 = vmul.f32 %v802_v14, %v751_v16  ;;  %v932_v61 = vsel %vm907_vm1, %v931_v35, %v838_v22  ;;  %v935_v37 = vrot.slane %v860_v29, 7 }
  0xb3   : > { %v986_v4 = vadd.f32 %v985_v34, %v984_v60  ;;  %v778_v3 = vadd.f32 %v777_v40, %v776_v49  ;;  %v805_v43 = vperm.slane %v1739_v1, 3  ;;  %v841_v7 = vmul.f32 %v801_v17, %v1836_v24  ;;  %v779_v34 = vld [vmem:[#allocation2] sm:$0x3] }
  0xb4   : > { %v989_v52 = vsel %vm967_vm2, %v930_v54, 0.0  ;;  %v863_v32 = vmul.f32 %v803_v9, %v760_v53  ;;  %v934_v2 = vsel %vm907_vm1, %v933_v50, %v839_v51  ;;  %v937_v59 = vrot.slane %v861_v30, 7 }
  0xb5   : > { %v988_v18 = vadd.f32 %v987_v56, %v986_v4  ;;  %v1838_v25 = vrot.slane %v1837_v20, 1  ;;  %v842_v5 = vmul.f32 %v802_v14, %v1839_v48  ;;  %v991_v44 = vsel %vm967_vm2, %v932_v61, 0.0 }
  0xb6   : > { %v864_v49 = vmul.f32 %v804_v8, %v769_v63  ;;  %v936_v62 = vsel %vm907_vm1, %v935_v37, %v840_v33  ;;  %v939_v13 = vrot.slane %v862_v36, 7  ;;  %v1841_v47 = vrot.slane %v1840_v55, 1 }
  0xb7   : > { %v589_v16 = vadd.f32 %v1838_v25, %v1837_v20  ;;  %v990_v15 = vadd.f32 %v989_v52, %v988_v18  ;;  %v843_v42 = vmul.f32 %v803_v9, %v1842_v19  ;;  %v993_v1 = vsel %vm967_vm2, %v934_v2, 0.0 }
  0xb8   : > { %v598_v41 = vadd.f32 %v1841_v47, %v1840_v55  ;;  %v865_v21 = vmul.f32 %v805_v43, %v778_v3  ;;  %v938_v12 = vsel %vm907_vm1, %v937_v59, %v841_v7  ;;  %v941_v26 = vrot.slane %v863_v32, 7 }
  0xb9   : > { %v992_v57 = vadd.f32 %v991_v44, %v990_v15  ;;  %v995_v27 = vsel %vm967_vm2, %v936_v62, 0.0  ;;  %v844_v17 = vmul.f32 %v804_v8, %v589_v16  ;;  %v940_v28 = vsel %vm907_vm1, %v939_v13, %v842_v5 }
  0xba   : > { %v943_v11 = vrot.slane %v864_v49, 7  ;;  %v997_v23 = vsel %vm967_vm2, %v938_v12, 0.0  ;;  %v845_v0 = vmul.f32 %v805_v43, %v598_v41  ;;  %v942_v45 = vsel %vm907_vm1, %v941_v26, %v843_v42 }
  0xbb   : > { %v994_v6 = vadd.f32 %v993_v1, %v992_v57  ;;  %v945_v40 = vrot.slane %v865_v21, 7  ;;  %v999_v46 = vsel %vm967_vm2, %v940_v28, 0.0  ;;  %v1001_v29 = vsel %vm967_vm2, %v942_v45, 0.0 }
  0xbc   : > { %v944_v22 = vsel %vm907_vm1, %v943_v11, %v844_v17 }
  0xbd   : > { %v996_v14 = vadd.f32 %v995_v27, %v994_v6  ;;  %v946_v31 = vsel %vm907_vm1, %v945_v40, %v845_v0  ;;  %v1003_v39 = vsel %vm967_vm2, %v944_v22, 0.0 }
  0xbe   : > { %v1005_v9 = vsel %vm967_vm2, %v946_v31, 0.0 }
  0xbf   : > { %v998_v58 = vadd.f32 %v997_v23, %v996_v14 }
  0xc1   : > { %v1000_v35 = vadd.f32 %v999_v46, %v998_v58 }
  0xc3   : > { %v1002_v53 = vadd.f32 %v1001_v29, %v1000_v35 }
  0xc5   : > { %v1004_v10 = vadd.f32 %v1003_v39, %v1002_v53 }
  0xc7   : > { %v1006_v51 = vadd.f32 %v1005_v9, %v1004_v10 }
  0xc9   : > { %1007 = vadd.xlane.f32.xlu0 %v1006_v51 }
 0x13b   : > { %1015 = sbr.rel (%p1138_p1) target bundleno = 362 (0x16a), region = 48 }
 0x13c   : > { %v1008_v30 = vpop.xlane.xlu0 %1007 }
 0x13d   : > { %v1009_v54 = vadd.f32 %v1008_v30, %v779_v34 }
 0x13f   : > { %1011 = vst.msk [vmem:[#allocation2] sm:$0x3] %vm1010_vm3, %v1009_v54 }
 0x140   : > { %v1220_v60 = vld [vmem:[#allocation3] ss:$0 sm:$0xff] }
 0x146   : > { %v1016_v50 = vld [vmem:[#allocation2] sm:$0x3] }
 0x147   : > { %v1017_v63 = vmul.f32 0.015625, %v1016_v50 }
 0x149   : > { %v1022_v8 = vadd.f32 %v1220_v60, %v1017_v63 }
 0x14b   : > { %v1023_v38 = vsub.f32 0.0, %v1022_v8 }
 0x14d   : > { %v1024_v33 = vmul.f32 1.442695, %v1023_v38 }
 0x14f   : > { %1221 = vpow2.f32 %v1024_v33 }
 0x155   : > { %v1222_v56 = vpop.eup %1221 }
 0x156   : > { %v1026_v36 = vadd.f32 1.0, %v1222_v56 }
 0x158   : > { %1223 = vrcp.f32 %v1026_v36  ;;  %v1038_v4 = vand.u32 2147483648, %v1026_v36  ;;  %vm1032_vm4 = vweird.f32 %v1026_v36  ;;  %v1036_v43 = vand.u32 2147483647, %v1026_v36 }
 0x15a   : > { %v1039_v7 = vor.u32 1.1754944e-38, %v1038_v4  ;;  %vm1037_vm7 = vcmp.eq.f32.partialorder %v1036_v43, 8.507059e+37 }
 0x15e   : > { %v1224_v61 = vpop.eup %1223 }
 0x15f   : > { %v1028_v37 = vmul.f32 %v1224_v61, %v1026_v36  ;;  %vm1033_vm5 = vweird.f32 %v1224_v61 }
 0x160   : > { %vm1034_vm6 = vmor %vm1032_vm4, %vm1033_vm5 }
 0x161   : > { %v1029_v3 = vsub.f32 1.0, %v1028_v37 }
 0x163   : > { %v1030_v24 = vmul.f32 %v1224_v61, %v1029_v3 }
 0x165   : > { %v1031_v52 = vadd.f32 %v1224_v61, %v1030_v24 }
 0x167   : > { %v1035_v32 = vsel %vm1034_vm6, %v1224_v61, %v1031_v52 }
 0x168   : > { %v1040_v2 = vsel %vm1037_vm7, %v1039_v7, %v1035_v32 }
 0x169   : > { %1042 = vst.msk [vmem:[%s1816_s3] sm:$0x3] %vm1010_vm3, %v1040_v2 }
 0x16a PF: > { %s19_s19 = sadd.s32 1, %s1309_s19   ;;  %s1843_s14 = smov %s1293_s15 }
 0x16b   : > { %p16_p2 = scmp.ge.s32.totalorder %s19_s19, 4   ;;  %s1844_s15 = smov %s1297_s16 }
 0x16c   : > { %s1845_s16 = smov %s1398_s26  ;;  %s1846_s17 = smov %s1305_s18 }
 0x16d   : > { %s1847_s18 = smov %s1849_s20  ;;  %18 = sbr.rel (!%p16_p2) target bundleno = 8 (0x8), region = 89 }
 0x172   :  { %1062 = vsyncpa [#allocation5], 1 }
 0x173   :  { %1064 = vsyncpa [#allocation5 + $0x1], 1 }
 0x174   :  { %1065 = vsyncpa [#allocation7], 1 }

</bundles_post_ra>
